<compile_context>
chip_gen: v7x
topology: tpu7x:2x2x1
jax: 0.10.0
libtpu: 0.0.40
codegen_flags: <defaults>
</compile_context>

<pallas_src>
import jax
import jax.numpy as jnp
from jax.experimental import pallas as pl
from jax.experimental.pallas import tpu as pltpu


def _normalize_kernel(x_ref, m_ref, s_ref, o_ref):
    # x_ref: (TM, TN) tile of the flattened image, m_ref/s_ref: (TM, 1)
    # per-row (== per-channel) mean / std.  Pure element-wise VPU work;
    # kernel is HBM-bandwidth bound.
    o_ref[...] = ((x_ref[...] - m_ref[...]) / s_ref[...]).astype(o_ref.dtype)


def _choose_tiles(R, L, itemsize):
    """Pick (TM, TN) dividing (R, L), TM % 8 == 0 / TN % 128 == 0 when possible
    (full-dim fallback otherwise), with each x tile capped at ~2 MiB so the
    double-buffered in+out working set fits scoped VMEM on all generations."""
    budget_elems = max(1, (2 * 1024 * 1024) // itemsize)

    # Column (lane) tile: largest multiple-of-128 divisor of L such that even
    # an 8-row tile fits the budget; fall back to the full dim (always legal).
    tn_cap = max(128, budget_elems // 8)
    TN, best, d = L, 0, 128
    while d <= min(L, tn_cap):
        if L % d == 0:
            best = d
        d += 128
    if best:
        TN = best

    # Row (sublane) tile: largest multiple-of-8 divisor of R within budget.
    tm_cap = max(8, budget_elems // TN)
    TM, best, d = R, 0, 8
    while d <= min(R, tm_cap):
        if R % d == 0:
            best = d
        d += 8
    if best:
        TM = best
    return TM, TN


def image_normalize(x_nchw, mean, std):
    """(x - mean) / std, mean/std shaped (C,), x NCHW. Returns NCHW."""
    B, C, H, W = x_nchw.shape
    R, L = B * C, H * W

    # Row-major reshape is free (no copy): row r corresponds to (b, c) with
    # c = r % C, so per-channel params become per-row columns.
    x2 = x_nchw.reshape(R, L)
    m_rows = jnp.tile(mean.astype(x_nchw.dtype), (B,)).reshape(R, 1)
    s_rows = jnp.tile(std.astype(x_nchw.dtype), (B,)).reshape(R, 1)

    TM, TN = _choose_tiles(R, L, x_nchw.dtype.itemsize)
    grid = (R // TM, L // TN)

    out = pl.pallas_call(
        _normalize_kernel,
        out_shape=jax.ShapeDtypeStruct((R, L), x_nchw.dtype),
        grid=grid,
        in_specs=[
            pl.BlockSpec((TM, TN), lambda i, j: (i, j)),   # x tile
            pl.BlockSpec((TM, 1), lambda i, j: (i, 0)),    # per-row mean
            pl.BlockSpec((TM, 1), lambda i, j: (i, 0)),    # per-row std
        ],
        out_specs=pl.BlockSpec((TM, TN), lambda i, j: (i, j)),
        compiler_params=pltpu.CompilerParams(
            dimension_semantics=("parallel", "parallel")),
    )(x2, m_rows, s_rows)

    return out.reshape(B, C, H, W)


_normalize_jit = jax.jit(image_normalize)


class ImageNormalizer:
    """Mirrors the PyTorch module: holds mean/std buffers, normalizes NCHW."""

    def __init__(self, mean, std):
        self.mean = jnp.asarray(mean, jnp.float32)   # (3,)
        self.std = jnp.asarray(std, jnp.float32)     # (3,)

    def __call__(self, x_nchw):
        return _normalize_jit(x_nchw, self.mean, self.std)


if __name__ == "__main__":
    key = jax.random.PRNGKey(0)
    x = jax.random.normal(key, (2, 3, 16, 16), jnp.float32)

    mean = (0.485, 0.456, 0.406)
    std = (0.229, 0.224, 0.225)

    norm = ImageNormalizer(mean, std)
    out = jax.block_until_ready(norm(x))

    # Pure-JAX reference (PyTorch semantics: broadcast (1,3,1,1) buffers).
    m = jnp.asarray(mean, jnp.float32).reshape(1, 3, 1, 1)
    s = jnp.asarray(std, jnp.float32).reshape(1, 3, 1, 1)
    ref = (x - m) / s

    assert out.shape == x.shape, out.shape
    assert jnp.allclose(out, ref, atol=1e-6, rtol=1e-6), float(
        jnp.max(jnp.abs(out - ref)))
    print("KERNEL_OK")
</pallas_src>

<mosaic_0001>
module attributes {stable_mosaic.version = 11 : i64} {
  func.func @_normalize_kernel(%arg0: i32, %arg1: i32, %arg2: memref<6x256xf32, #tpu.memory_space<vmem>>, %arg3: memref<6x1xf32, #tpu.memory_space<vmem>>, %arg4: memref<6x1xf32, #tpu.memory_space<vmem>>, %arg5: memref<6x256xf32, #tpu.memory_space<vmem>>) attributes {dimension_semantics = [#tpu.dimension_semantics<parallel>, #tpu.dimension_semantics<parallel>], iteration_bounds = array<i64: 1, 1>, scalar_prefetch = 0 : i64, scratch_operands = 0 : i64, tpu.core_type = #tpu.core_type<tc>, window_params = [{transform_indices = @transform_0, window_bounds = array<i64: 6, 256>}, {transform_indices = @transform_1, window_bounds = array<i64: 6, 1>}, {transform_indices = @transform_2, window_bounds = array<i64: 6, 1>}, {transform_indices = @transform_3, window_bounds = array<i64: 6, 256>}]} {
    %c0 = arith.constant 0 : index
    %c0_0 = arith.constant 0 : index
    %0 = vector.load %arg2[%c0, %c0_0] : memref<6x256xf32, #tpu.memory_space<vmem>>, vector<6x256xf32>
    %c0_1 = arith.constant 0 : index
    %c0_2 = arith.constant 0 : index
    %1 = vector.load %arg3[%c0_1, %c0_2] : memref<6x1xf32, #tpu.memory_space<vmem>>, vector<6x1xf32>
    %2 = vector.broadcast %1 : vector<6x1xf32> to vector<6x256xf32>
    %3 = arith.subf %0, %2 : vector<6x256xf32>
    %c0_3 = arith.constant 0 : index
    %c0_4 = arith.constant 0 : index
    %4 = vector.load %arg4[%c0_3, %c0_4] : memref<6x1xf32, #tpu.memory_space<vmem>>, vector<6x1xf32>
    %5 = vector.broadcast %4 : vector<6x1xf32> to vector<6x256xf32>
    %6 = arith.divf %3, %5 : vector<6x256xf32>
    %c0_5 = arith.constant 0 : index
    %c0_6 = arith.constant 0 : index
    %7 = vector.load %arg5[%c0_5, %c0_6] : memref<6x256xf32, #tpu.memory_space<vmem>>, vector<6x256xf32>
    tpu.vector_store %arg5[%c0_5, %c0_6], %6 {strides = array<i32>} : memref<6x256xf32, #tpu.memory_space<vmem>>, vector<6x256xf32>,
    return
  }
  func.func @transform_0(%arg0: i32, %arg1: i32) -> (i32, i32) {
    %c0_i32 = arith.constant 0 : i32
    return %arg0, %arg1 : i32, i32
  }
  func.func @transform_1(%arg0: i32, %arg1: i32) -> (i32, i32) {
    %c0_i32 = arith.constant 0 : i32
    %c0_i32_0 = arith.constant 0 : i32
    return %arg0, %c0_i32 : i32, i32
  }
  func.func @transform_2(%arg0: i32, %arg1: i32) -> (i32, i32) {
    %c0_i32 = arith.constant 0 : i32
    %c0_i32_0 = arith.constant 0 : i32
    return %arg0, %c0_i32 : i32, i32
  }
  func.func @transform_3(%arg0: i32, %arg1: i32) -> (i32, i32) {
    %c0_i32 = arith.constant 0 : i32
    return %arg0, %arg1 : i32, i32
  }
}

</mosaic_0001>

<bundles_post_ra>
// kernel: tile.13
= control target key start
LH: loop header
LB: loop body
LE: loop exit
PB: predicated region body
PF: predicated region fallthrough
CT: control target
= control target key end

     0   :  { %s22_s0 = inlined_call_operand.vmem [shape: f32[3], index: 0, kind: input, shape index: {}]   ;;  %s23_s1 = inlined_call_operand.vmem [shape: f32[2,3], index: 1, kind: output, shape index: {}]  }
   0x1   :  { %v4_v0 = vld [vmem:[%s22_s0] ss:$0 sm:$0xff] }
   0x2   :  { %5 = vst [vmem:[%s23_s1] sm:$0x3] %v4_v0 }

// kernel: tile.1
= control target key start
LH: loop header
LB: loop body
LE: loop exit
PB: predicated region body
PF: predicated region fallthrough
CT: control target
= control target key end

     0   :  { %vm7_vm0 = vcmask 7168   ;;  %s26_s10 = smov 126   ;;  %s49_s0 = inlined_call_operand.vmem [shape: f32[2,3], index: 0, kind: input, shape index: {}]   ;;  %s50_s1 = inlined_call_operand.vmem [shape: f32[6,1], index: 1, kind: output, shape index: {}]  }
   0x1   :  { %v4_v0 = vld [vmem:[%s49_s0] sm:$0x3]  ;;  %s25_s0 = smov 127  }
   0x2   :  { %5 = vst [vmem:[#allocation0] sm:$0x3] %v4_v0 }
   0x9   :  { %v9_v1 = vld [vmem:[#allocation0] sm:$0x3]  }
   0xa   :  { %v6_v2 = vld [vmem:[#allocation0] sm:$0x3]   ;;  %10 = vrot.lane.b32.xlu0 %v9_v1, %s25_s0 }
   0xb   :  { %8 = vst.msk [vmem:[%s50_s1] ss:$3 sm:$0x3] %vm7_vm0, %v6_v2   ;;  %v15_v3 = vld [vmem:[#allocation0] sm:$0x3]  }
   0xe   :  { %16 = vrot.lane.b32.xlu0 %v15_v3, %s26_s10 }
  0x7c   :  { %v11_v4 = vpop.permute.xlu0 %10  }
  0x7d   :  { %21 = vst.msk [vmem:[%s50_s1 + $0x1] ss:$3 sm:$0x3] %vm7_vm0, %v11_v4  }
  0x80   :  { %v17_v5 = vpop.permute.xlu0 %16  }
  0x81   :  { %22 = vst.msk [vmem:[%s50_s1 + $0x2] ss:$3 sm:$0x3] %vm7_vm0, %v17_v5  }

// kernel: image_normalize.1
= control target key start
LH: loop header
LB: loop body
LE: loop exit
PB: predicated region body
PF: predicated region fallthrough
CT: control target
= control target key end

     0   :  { %v43_v0 = vmov 0   ;;  %s82_s2 = inlined_call_operand.vmem [shape: f32[6,1], index: 2, kind: input, shape index: {}]   ;;  %s83_s1 = inlined_call_operand.vmem [shape: f32[6,1], index: 1, kind: input, shape index: {}]   ;;  %s84_s0 = inlined_call_operand.vmem [shape: f32[6,256], index: 0, kind: input, shape index: {}]   ;;  %s85_s3 = inlined_call_operand.vmem [shape: f32[6,256], index: 3, kind: output, shape index: {}]  }
   0x1   :  { %40 = vset.pattern.permute.xlu0 %v43_v0  ;;  %v24_v1 = vld [vmem:[%s82_s2] sm:$0x3f]  ;;  %v15_v6 = vld [vmem:[%s84_s0 + $0x8] sm:$0x3f] }
   0x2   :  { %27 = vperm.xlu0 %40, %v24_v1   ;;  %v16_v2 = vld [vmem:[%s83_s1] sm:$0x3f] }
   0x3   :  { %v14_v5 = vld [vmem:[%s84_s0] sm:$0x3f] }
   0x6   :  { %19 = vperm.xlu0 %40, %v16_v2  }
  0x81   :  { %v28_v3 = vpop.permute.xlu0 %27 }
  0x82   :  { %41 = vrcp.f32 %v28_v3 }
  0x85   :  { %v20_v4 = vpop.permute.xlu0 %19 }
  0x86   :  { %v22_v7 = vsub.f32 %v14_v5, %v20_v4  ;;  %v23_v8 = vsub.f32 %v15_v6, %v20_v4 }
  0x8c   :  { %v42_v9 = vpop.eup %41 }
  0x8d   :  { %v31_v10 = vmul.f32 %v42_v9, %v22_v7  ;;  %v32_v11 = vmul.f32 %v42_v9, %v23_v8 }
  0x8f   :  { %33 = vst [vmem:[%s85_s3] sm:$0x3f] %v31_v10  ;;  %34 = vst [vmem:[%s85_s3 + $0x8] sm:$0x3f] %v32_v11 }

</bundles_post_ra>
